<compile_context>
chip_gen: v6e
topology: v6e:2x2x1
jax: 0.10.0
libtpu: 0.0.40
codegen_flags: <defaults>
</compile_context>

<pallas_src>
import math
import functools

import jax
import jax.numpy as jnp
from jax.experimental import pallas as pl
from jax.experimental.pallas import tpu as pltpu


# ----------------------------- small helpers --------------------------------

def _round_up(x, m):
    return ((x + m - 1) // m) * m


def _layernorm(x, w, b, eps=1e-5):
    # x: (T, C) f32, w/b: (1, C) f32
    mu = jnp.mean(x, axis=-1, keepdims=True)
    var = jnp.mean((x - mu) ** 2, axis=-1, keepdims=True)
    return (x - mu) * jax.lax.rsqrt(var + eps) * w + b


def _hw_config():
    """(tile_t_cap, tile_v_cap, vmem_limit_bytes) sized per TPU generation."""
    try:
        vmem_bytes = pltpu.get_tpu_info().vmem_capacity_bytes
    except Exception:
        vmem_bytes = None
    if vmem_bytes is None:
        return 256, 512, None                       # unknown: conservative
    if vmem_bytes <= 96 * 1024 * 1024:              # v7x-class (64 MiB / TC)
        return 256, 512, 40 * 1024 * 1024
    return 512, 1024, 96 * 1024 * 1024              # v5e / v6e (128 MiB)


# ----------------------------- Pallas kernels --------------------------------

def ln_qkv_kernel(x_ref, lnw_ref, lnb_ref, wqkv_ref, bqkv_ref, qkv_ref):
    """LayerNorm + fused QKV projection for one (TILE_T, C) tile."""
    x = x_ref[0].astype(jnp.float32)                    # (T_t, C)
    h = _layernorm(x, lnw_ref[...], lnb_ref[...])
    qkv = jnp.dot(h.astype(jnp.bfloat16), wqkv_ref[...],
                  preferred_element_type=jnp.float32) + bqkv_ref[...]
    qkv_ref[0] = qkv.astype(qkv_ref.dtype)


def attn_kernel(q_ref, k_ref, v_ref, o_ref, m_sc, l_sc, acc_sc,
                *, scale, tile_q, tile_k):
    """Flash-style causal attention: heads batched, online softmax over KV tiles."""
    qi = pl.program_id(1)
    ki = pl.program_id(2)

    @pl.when(ki == 0)
    def _():
        m_sc[...] = jnp.full(m_sc.shape, -jnp.inf, m_sc.dtype)
        l_sc[...] = jnp.zeros(l_sc.shape, l_sc.dtype)
        acc_sc[...] = jnp.zeros(acc_sc.shape, acc_sc.dtype)

    # Skip KV tiles that lie entirely above the causal diagonal.
    @pl.when(ki * tile_k <= qi * tile_q + (tile_q - 1))
    def _():
        q = q_ref[0]                                    # (H, T_q, D) bf16
        k = k_ref[0]                                    # (H, T_k, D) bf16
        v = v_ref[0]                                    # (H, T_k, D) bf16
        s = jnp.einsum('htd,hsd->hts', q, k,
                       preferred_element_type=jnp.float32) * scale
        # causal mask computed once per (q-tile, kv-tile), shared by all heads
        row = qi * tile_q + jax.lax.broadcasted_iota(jnp.int32,
                                                     (tile_q, tile_k), 0)
        col = ki * tile_k + jax.lax.broadcasted_iota(jnp.int32,
                                                     (tile_q, tile_k), 1)
        s = jnp.where((col <= row)[None], s, -jnp.inf)

        m_prev = m_sc[...]                              # (H, T_q, 1)
        m_new = jnp.maximum(m_prev, s.max(axis=-1, keepdims=True))
        alpha = jnp.exp(m_prev - m_new)
        p = jnp.exp(s - m_new)
        l_sc[...] = alpha * l_sc[...] + p.sum(axis=-1, keepdims=True)
        acc_sc[...] = alpha * acc_sc[...] + jnp.einsum(
            'hts,hsd->htd', p.astype(v.dtype), v,
            preferred_element_type=jnp.float32)
        m_sc[...] = m_new

    @pl.when(ki == pl.num_programs(2) - 1)
    def _():
        inv_l = pl.reciprocal(l_sc[...], approx=True)
        o_ref[0] = (acc_sc[...] * inv_l).astype(o_ref.dtype)


def proj_mlp_kernel(x_ref, y_ref, wo_ref, bo_ref, ln2w_ref, ln2b_ref,
                    wfc_ref, bfc_ref, wpr_ref, bpr_ref, o_ref):
    """Attention out-proj + residual, LN2 + MLP (erf GELU) + residual."""
    x = x_ref[0].astype(jnp.float32)                    # residual stream (T_t, C)
    y = y_ref[0]                                        # attention output bf16
    x = x + jnp.dot(y, wo_ref[...],
                    preferred_element_type=jnp.float32) + bo_ref[...]
    h = _layernorm(x, ln2w_ref[...], ln2b_ref[...])
    h = jnp.dot(h.astype(jnp.bfloat16), wfc_ref[...],
                preferred_element_type=jnp.float32) + bfc_ref[...]
    h = jax.nn.gelu(h, approximate=False)               # exact erf GELU (nn.GELU)
    h = jnp.dot(h.astype(jnp.bfloat16), wpr_ref[...],
                preferred_element_type=jnp.float32) + bpr_ref[...]
    o_ref[0] = (x + h).astype(o_ref.dtype)


def head_kernel(x_ref, lnw_ref, lnb_ref, wh_ref, o_ref, h_sc):
    """Final LayerNorm (cached in VMEM scratch) + vocab-tiled LM head matmul."""
    @pl.when(pl.program_id(2) == 0)
    def _():
        x = x_ref[0].astype(jnp.float32)
        h_sc[...] = _layernorm(x, lnw_ref[...], lnb_ref[...]).astype(h_sc.dtype)
    o_ref[0] = jnp.dot(h_sc[...], wh_ref[...],
                       preferred_element_type=jnp.float32).astype(o_ref.dtype)


# ----------------------------- wrappers --------------------------------------

def _fuse_block_params(p):
    """Fuse QKV weights/biases and cast: matmul weights bf16, LN/biases f32."""
    (ln1w, ln1b, wq, bq, wk, bk, wv, bv, wo, bo,
     ln2w, ln2b, wfc, bfc, wpr, bpr) = p
    wqkv = jnp.concatenate([wq, wk, wv], axis=1).astype(jnp.bfloat16)
    bqkv = jnp.concatenate([bq, bk, bv], axis=1).astype(jnp.float32)
    return (ln1w.astype(jnp.float32), ln1b.astype(jnp.float32),
            wqkv, bqkv,
            wo.astype(jnp.bfloat16), bo.astype(jnp.float32),
            ln2w.astype(jnp.float32), ln2b.astype(jnp.float32),
            wfc.astype(jnp.bfloat16), bfc.astype(jnp.float32),
            wpr.astype(jnp.bfloat16), bpr.astype(jnp.float32))


def run_block(x, params, n_head, tile_t, vmem_limit):
    (ln1w, ln1b, wqkv, bqkv, wo, bo, ln2w, ln2b, wfc, bfc, wpr, bpr) = params
    B, T, C = x.shape
    H = n_head
    D = C // H
    nT = T // tile_t

    cp2 = pltpu.CompilerParams(dimension_semantics=("parallel", "parallel"),
                               vmem_limit_bytes=vmem_limit)
    cp3 = pltpu.CompilerParams(
        dimension_semantics=("parallel", "parallel", "arbitrary"),
        vmem_limit_bytes=vmem_limit)

    # --- 1) LN1 + fused QKV projection -------------------------------------
    qkv = pl.pallas_call(
        ln_qkv_kernel,
        out_shape=jax.ShapeDtypeStruct((B, T, 3 * C), jnp.bfloat16),
        grid=(B, nT),
        in_specs=[
            pl.BlockSpec((1, tile_t, C), lambda b, t: (b, t, 0)),
            pl.BlockSpec((1, C), lambda b, t: (0, 0)),
            pl.BlockSpec((1, C), lambda b, t: (0, 0)),
            pl.BlockSpec((C, 3 * C), lambda b, t: (0, 0)),
            pl.BlockSpec((1, 3 * C), lambda b, t: (0, 0)),
        ],
        out_specs=pl.BlockSpec((1, tile_t, 3 * C), lambda b, t: (b, t, 0)),
        compiler_params=cp2,
    )(x, ln1w, ln1b, wqkv, bqkv)

    # head split (layout plumbing in XLA): (B,T,3,H,D) -> 3 x (B,H,T,D)
    qkv = qkv.reshape(B, T, 3, H, D).transpose(2, 0, 3, 1, 4)
    q, k, v = qkv[0], qkv[1], qkv[2]

    # --- 2) flash-style causal attention ------------------------------------
    attn = functools.partial(attn_kernel, scale=1.0 / math.sqrt(D),
                             tile_q=tile_t, tile_k=tile_t)
    y = pl.pallas_call(
        attn,
        out_shape=jax.ShapeDtypeStruct((B, H, T, D), jnp.bfloat16),
        grid=(B, nT, nT),
        in_specs=[
            pl.BlockSpec((1, H, tile_t, D), lambda b, qi, ki: (b, 0, qi, 0)),
            pl.BlockSpec((1, H, tile_t, D), lambda b, qi, ki: (b, 0, ki, 0)),
            pl.BlockSpec((1, H, tile_t, D), lambda b, qi, ki: (b, 0, ki, 0)),
        ],
        out_specs=pl.BlockSpec((1, H, tile_t, D), lambda b, qi, ki: (b, 0, qi, 0)),
        scratch_shapes=[
            pltpu.VMEM((H, tile_t, 1), jnp.float32),     # m
            pltpu.VMEM((H, tile_t, 1), jnp.float32),     # l
            pltpu.VMEM((H, tile_t, D), jnp.float32),     # acc
        ],
        compiler_params=cp3,
    )(q, k, v)

    # head merge: (B,H,T,D) -> (B,T,C)
    y = y.transpose(0, 2, 1, 3).reshape(B, T, C)

    # --- 3) out-proj + residual + LN2 + MLP + residual ----------------------
    x = pl.pallas_call(
        proj_mlp_kernel,
        out_shape=jax.ShapeDtypeStruct((B, T, C), jnp.bfloat16),
        grid=(B, nT),
        in_specs=[
            pl.BlockSpec((1, tile_t, C), lambda b, t: (b, t, 0)),   # residual x
            pl.BlockSpec((1, tile_t, C), lambda b, t: (b, t, 0)),   # attention y
            pl.BlockSpec((C, C), lambda b, t: (0, 0)),
            pl.BlockSpec((1, C), lambda b, t: (0, 0)),
            pl.BlockSpec((1, C), lambda b, t: (0, 0)),
            pl.BlockSpec((1, C), lambda b, t: (0, 0)),
            pl.BlockSpec((C, 4 * C), lambda b, t: (0, 0)),
            pl.BlockSpec((1, 4 * C), lambda b, t: (0, 0)),
            pl.BlockSpec((4 * C, C), lambda b, t: (0, 0)),
            pl.BlockSpec((1, C), lambda b, t: (0, 0)),
        ],
        out_specs=pl.BlockSpec((1, tile_t, C), lambda b, t: (b, t, 0)),
        compiler_params=cp2,
    )(x, y, wo, bo, ln2w, ln2b, wfc, bfc, wpr, bpr)
    return x


def run_head(x, lnf_w, lnf_b, w_head_pad, tile_t, tile_v, vmem_limit):
    B, T, C = x.shape
    V_pad = w_head_pad.shape[1]
    cp3 = pltpu.CompilerParams(
        dimension_semantics=("parallel", "parallel", "arbitrary"),
        vmem_limit_bytes=vmem_limit)
    return pl.pallas_call(
        head_kernel,
        out_shape=jax.ShapeDtypeStruct((B, T, V_pad), jnp.float32),
        grid=(B, T // tile_t, V_pad // tile_v),
        in_specs=[
            pl.BlockSpec((1, tile_t, C), lambda b, t, j: (b, t, 0)),
            pl.BlockSpec((1, C), lambda b, t, j: (0, 0)),
            pl.BlockSpec((1, C), lambda b, t, j: (0, 0)),
            pl.BlockSpec((C, tile_v), lambda b, t, j: (0, j)),
        ],
        out_specs=pl.BlockSpec((1, tile_t, tile_v), lambda b, t, j: (b, t, j)),
        scratch_shapes=[pltpu.VMEM((tile_t, C), jnp.bfloat16)],
        compiler_params=cp3,
    )(x, lnf_w, lnf_b, w_head_pad)


def gpt_forward(idx, wte, pos_emb, block_params, lnf_w, lnf_b, w_head, n_head):
    """Full GPT forward: returns logits (B, T, vocab_size). loss=None path."""
    tok = jnp.take(wte, idx, axis=0)                    # (B, T, C) embedding gather
    B, T, C = tok.shape
    x = tok + pos_emb[:, :T, :]                         # drop is a no-op (p=0.0)

    tile_t_cap, tile_v_cap, vmem_limit = _hw_config()
    tile_t = min(tile_t_cap, _round_up(T, 8))
    T_pad = _round_up(T, tile_t)
    if T_pad != T:
        # zero-padded rows never influence real rows (causal mask; row-local
        # LN/MLP) and are sliced off at the end.
        x = jnp.pad(x, ((0, 0), (0, T_pad - T), (0, 0)))
    x = x.astype(jnp.bfloat16)

    V = w_head.shape[1]
    V_pad = _round_up(V, 128)
    tile_v = min(tile_v_cap, V_pad)
    w_head_pad = jnp.pad(w_head, ((0, 0), (0, V_pad - V))).astype(jnp.bfloat16)

    for p in block_params:
        x = run_block(x, _fuse_block_params(p), n_head, tile_t, vmem_limit)

    logits = run_head(x, lnf_w.astype(jnp.float32), lnf_b.astype(jnp.float32),
                      w_head_pad, tile_t, tile_v, vmem_limit)
    return logits[:, :T, :V]


# ----------------------------- pure-JAX reference ----------------------------

def _ref_ln(x, w, b, eps=1e-5):
    mu = jnp.mean(x, axis=-1, keepdims=True)
    var = jnp.mean((x - mu) ** 2, axis=-1, keepdims=True)
    return (x - mu) / jnp.sqrt(var + eps) * w + b


def ref_forward(idx, wte, pos_emb, block_params, lnf_w, lnf_b, w_head, n_head):
    tok = jnp.take(wte, idx, axis=0)
    B, T, C = tok.shape
    D = C // n_head
    x = tok + pos_emb[:, :T, :]
    causal = jnp.tril(jnp.ones((T, T), bool))
    for (ln1w, ln1b, wq, bq, wk, bk, wv, bv, wo, bo,
         ln2w, ln2b, wfc, bfc, wpr, bpr) in block_params:
        h = _ref_ln(x, ln1w, ln1b)
        q = (h @ wq + bq).reshape(B, T, n_head, D).transpose(0, 2, 1, 3)
        k = (h @ wk + bk).reshape(B, T, n_head, D).transpose(0, 2, 1, 3)
        v = (h @ wv + bv).reshape(B, T, n_head, D).transpose(0, 2, 1, 3)
        att = (q @ k.transpose(0, 1, 3, 2)) / math.sqrt(D)
        att = jnp.where(causal[None, None], att, -jnp.inf)
        att = jax.nn.softmax(att, axis=-1)
        y = (att @ v).transpose(0, 2, 1, 3).reshape(B, T, C)
        x = x + (y @ wo + bo)
        h = _ref_ln(x, ln2w, ln2b)
        h = jax.nn.gelu(h @ wfc + bfc, approximate=False)
        x = x + (h @ wpr + bpr)
    h = _ref_ln(x, lnf_w, lnf_b)
    return h @ w_head


# ----------------------------- main -------------------------------------------

if __name__ == "__main__":
    # small config consistent with GPT(vocab_size, block_size, ...)
    B, T = 2, 8
    vocab_size, block_size = 64, 16
    n_layer, n_head, n_embd = 2, 4, 32
    C = n_embd

    key = jax.random.PRNGKey(0)

    def normal(key, shape, std=0.02):
        return std * jax.random.normal(key, shape, dtype=jnp.float32)

    keys = iter(jax.random.split(key, 64))

    # parameters (PyTorch _init_weights: Linear/Embedding ~ N(0, 0.02), bias 0,
    # LayerNorm weight 1 / bias 0).  pos_emb is zeros at init in the reference;
    # we use small random values here to actually exercise the add.
    wte = normal(next(keys), (vocab_size, C))
    pos_emb = normal(next(keys), (1, block_size, C))

    block_params = []
    for _ in range(n_layer):
        ln1w = jnp.ones((1, C), jnp.float32); ln1b = jnp.zeros((1, C), jnp.float32)
        wq = normal(next(keys), (C, C)); bq = jnp.zeros((1, C), jnp.float32)
        wk = normal(next(keys), (C, C)); bk = jnp.zeros((1, C), jnp.float32)
        wv = normal(next(keys), (C, C)); bv = jnp.zeros((1, C), jnp.float32)
        wo = normal(next(keys), (C, C)); bo = jnp.zeros((1, C), jnp.float32)
        ln2w = jnp.ones((1, C), jnp.float32); ln2b = jnp.zeros((1, C), jnp.float32)
        wfc = normal(next(keys), (C, 4 * C)); bfc = jnp.zeros((1, 4 * C), jnp.float32)
        wpr = normal(next(keys), (4 * C, C)); bpr = jnp.zeros((1, C), jnp.float32)
        block_params.append((ln1w, ln1b, wq, bq, wk, bk, wv, bv, wo, bo,
                             ln2w, ln2b, wfc, bfc, wpr, bpr))

    lnf_w = jnp.ones((1, C), jnp.float32)
    lnf_b = jnp.zeros((1, C), jnp.float32)
    w_head = normal(next(keys), (C, vocab_size))   # head has no bias

    idx = jax.random.randint(next(keys), (B, T), 0, vocab_size, dtype=jnp.int32)

    logits = gpt_forward(idx, wte, pos_emb, block_params,
                         lnf_w, lnf_b, w_head, n_head)
    logits = jax.block_until_ready(logits)

    ref = ref_forward(idx, wte, pos_emb, block_params,
                      lnf_w, lnf_b, w_head, n_head)
    ref = jax.block_until_ready(ref)

    assert logits.shape == (B, T, vocab_size)
    # bf16 storage / bf16 MXU inputs (f32 accumulation) + approx reciprocal
    # => compare against the fp32 reference with a loosened tolerance.
    max_err = float(jnp.max(jnp.abs(logits - ref)))
    assert jnp.allclose(logits, ref, atol=2e-2, rtol=2e-2), max_err

    print("KERNEL_OK")
</pallas_src>

<mosaic_0001>
module attributes {stable_mosaic.version = 11 : i64} {
  func.func @ln_qkv_kernel(%arg0: i32, %arg1: i32, %arg2: memref<1x8x32xbf16, #tpu.memory_space<vmem>>, %arg3: memref<1x32xf32, #tpu.memory_space<vmem>>, %arg4: memref<1x32xf32, #tpu.memory_space<vmem>>, %arg5: memref<32x96xbf16, #tpu.memory_space<vmem>>, %arg6: memref<1x96xf32, #tpu.memory_space<vmem>>, %arg7: memref<1x8x96xbf16, #tpu.memory_space<vmem>>) attributes {dimension_semantics = [#tpu.dimension_semantics<parallel>, #tpu.dimension_semantics<parallel>], iteration_bounds = array<i64: 2, 1>, scalar_prefetch = 0 : i64, scratch_operands = 0 : i64, tpu.core_type = #tpu.core_type<tc>, window_params = [{transform_indices = @transform_0, window_bounds = array<i64: 1, 8, 32>}, {pipeline_mode = #tpu.pipeline_mode<synchronous>, transform_indices = @transform_1, window_bounds = array<i64: 1, 32>}, {pipeline_mode = #tpu.pipeline_mode<synchronous>, transform_indices = @transform_2, window_bounds = array<i64: 1, 32>}, {pipeline_mode = #tpu.pipeline_mode<synchronous>, transform_indices = @transform_3, window_bounds = array<i64: 32, 96>}, {pipeline_mode = #tpu.pipeline_mode<synchronous>, transform_indices = @transform_4, window_bounds = array<i64: 1, 96>}, {transform_indices = @transform_5, window_bounds = array<i64: 1, 8, 96>}]} {
    %c0 = arith.constant 0 : index
    %c0_0 = arith.constant 0 : index
    %c0_1 = arith.constant 0 : index
    %0 = vector.load %arg2[%c0, %c0_0, %c0_1] : memref<1x8x32xbf16, #tpu.memory_space<vmem>>, vector<1x8x32xbf16>
    %1 = vector.shape_cast %0 : vector<1x8x32xbf16> to vector<8x32xbf16>
    %2 = arith.extf %1 : vector<8x32xbf16> to vector<8x32xf32>
    %c0_2 = arith.constant 0 : index
    %c0_3 = arith.constant 0 : index
    %3 = vector.load %arg3[%c0_2, %c0_3] : memref<1x32xf32, #tpu.memory_space<vmem>>, vector<1x32xf32>
    %c0_4 = arith.constant 0 : index
    %c0_5 = arith.constant 0 : index
    %4 = vector.load %arg4[%c0_4, %c0_5] : memref<1x32xf32, #tpu.memory_space<vmem>>, vector<1x32xf32>
    %cst = arith.constant dense<0.000000e+00> : vector<8xf32>
    %5 = vector.multi_reduction <add>, %2, %cst [1] : vector<8x32xf32> to vector<8xf32>
    %6 = vector.shape_cast %5 : vector<8xf32> to vector<8x1xf32>
    %cst_6 = arith.constant 3.200000e+01 : f32
    %7 = vector.broadcast %cst_6 : f32 to vector<8x1xf32>
    %8 = arith.divf %6, %7 : vector<8x1xf32>
    %9 = vector.broadcast %8 : vector<8x1xf32> to vector<8x32xf32>
    %10 = arith.subf %2, %9 : vector<8x32xf32>
    %11 = arith.mulf %10, %10 : vector<8x32xf32>
    %cst_7 = arith.constant dense<0.000000e+00> : vector<8xf32>
    %12 = vector.multi_reduction <add>, %11, %cst_7 [1] : vector<8x32xf32> to vector<8xf32>
    %13 = vector.shape_cast %12 : vector<8xf32> to vector<8x1xf32>
    %cst_8 = arith.constant 3.200000e+01 : f32
    %14 = vector.broadcast %cst_8 : f32 to vector<8x1xf32>
    %15 = arith.divf %13, %14 : vector<8x1xf32>
    %16 = vector.broadcast %8 : vector<8x1xf32> to vector<8x32xf32>
    %17 = arith.subf %2, %16 : vector<8x32xf32>
    %cst_9 = arith.constant 9.99999974E-6 : f32
    %18 = vector.broadcast %cst_9 : f32 to vector<8x1xf32>
    %19 = arith.addf %15, %18 : vector<8x1xf32>
    %20 = math.rsqrt %19 : vector<8x1xf32>
    %21 = vector.broadcast %20 : vector<8x1xf32> to vector<8x32xf32>
    %22 = arith.mulf %17, %21 : vector<8x32xf32>
    %23 = vector.broadcast %3 : vector<1x32xf32> to vector<8x32xf32>
    %24 = arith.mulf %22, %23 : vector<8x32xf32>
    %25 = vector.broadcast %4 : vector<1x32xf32> to vector<8x32xf32>
    %26 = arith.addf %24, %25 : vector<8x32xf32>
    %27 = arith.truncf %26 : vector<8x32xf32> to vector<8x32xbf16>
    %c0_10 = arith.constant 0 : index
    %c0_11 = arith.constant 0 : index
    %28 = vector.load %arg5[%c0_10, %c0_11] : memref<32x96xbf16, #tpu.memory_space<vmem>>, vector<32x96xbf16>
    %cst_12 = arith.constant dense<0.000000e+00> : vector<8x96xf32>
    %29 = tpu.matmul %27, %28, %cst_12 {dimension_numbers = #tpu.dot_dimension_numbers<[1], [0], [0], [1], [0, 0, 1, 1], [], []>} : vector<8x32xbf16>, vector<32x96xbf16>, vector<8x96xf32> -> vector<8x96xf32>
    %c0_13 = arith.constant 0 : index
    %c0_14 = arith.constant 0 : index
    %30 = vector.load %arg6[%c0_13, %c0_14] : memref<1x96xf32, #tpu.memory_space<vmem>>, vector<1x96xf32>
    %31 = vector.broadcast %30 : vector<1x96xf32> to vector<8x96xf32>
    %32 = arith.addf %29, %31 : vector<8x96xf32>
    %33 = arith.truncf %32 : vector<8x96xf32> to vector<8x96xbf16>
    %c0_15 = arith.constant 0 : index
    %c0_16 = arith.constant 0 : index
    %c0_17 = arith.constant 0 : index
    %34 = vector.load %arg7[%c0_15, %c0_16, %c0_17] : memref<1x8x96xbf16, #tpu.memory_space<vmem>>, vector<1x8x96xbf16>
    %35 = vector.shape_cast %34 : vector<1x8x96xbf16> to vector<8x96xbf16>
    %36 = vector.shape_cast %33 : vector<8x96xbf16> to vector<1x8x96xbf16>
    tpu.vector_store %arg7[%c0_15, %c0_16, %c0_17], %36 {strides = array<i32>} : memref<1x8x96xbf16, #tpu.memory_space<vmem>>, vector<1x8x96xbf16>,
    return
  }
  func.func @transform_0(%arg0: i32, %arg1: i32) -> (i32, i32, i32) {
    %c0_i32 = arith.constant 0 : i32
    %c0_i32_0 = arith.constant 0 : i32
    return %arg0, %arg1, %c0_i32 : i32, i32, i32
  }
  func.func @transform_1(%arg0: i32, %arg1: i32) -> (i32, i32) {
    %c0_i32 = arith.constant 0 : i32
    %c0_i32_0 = arith.constant 0 : i32
    %c0_i32_1 = arith.constant 0 : i32
    return %c0_i32, %c0_i32_0 : i32, i32
  }
  func.func @transform_2(%arg0: i32, %arg1: i32) -> (i32, i32) {
    %c0_i32 = arith.constant 0 : i32
    %c0_i32_0 = arith.constant 0 : i32
    %c0_i32_1 = arith.constant 0 : i32
    return %c0_i32, %c0_i32_0 : i32, i32
  }
  func.func @transform_3(%arg0: i32, %arg1: i32) -> (i32, i32) {
    %c0_i32 = arith.constant 0 : i32
    %c0_i32_0 = arith.constant 0 : i32
    %c0_i32_1 = arith.constant 0 : i32
    return %c0_i32, %c0_i32_0 : i32, i32
  }
  func.func @transform_4(%arg0: i32, %arg1: i32) -> (i32, i32) {
    %c0_i32 = arith.constant 0 : i32
    %c0_i32_0 = arith.constant 0 : i32
    %c0_i32_1 = arith.constant 0 : i32
    return %c0_i32, %c0_i32_0 : i32, i32
  }
  func.func @transform_5(%arg0: i32, %arg1: i32) -> (i32, i32, i32) {
    %c0_i32 = arith.constant 0 : i32
    %c0_i32_0 = arith.constant 0 : i32
    return %arg0, %arg1, %c0_i32 : i32, i32, i32
  }
}

</mosaic_0001>

<bundles_post_ra>
// kernel: tpu_custom_call.1
= control target key start
LH: loop header
LB: loop body
LE: loop exit
PB: predicated region body
PF: predicated region fallthrough
CT: control target
= control target key end

     0   :  { %s966_s0 = inlined_call_operand.hbm [shape: bf16[2,8,32], index: 0, kind: input, shape index: {}]   ;;  %s967_s1 = inlined_call_operand.vmem [shape: f32[1,32], index: 1, kind: input, shape index: {}]   ;;  %s968_s2 = inlined_call_operand.vmem [shape: f32[1,32], index: 2, kind: input, shape index: {}]   ;;  %s969_s3 = inlined_call_operand.hbm [shape: bf16[32,96], index: 3, kind: input, shape index: {}]   ;;  %s970_s4 = inlined_call_operand.vmem [shape: f32[1,96], index: 4, kind: input, shape index: {}]   ;;  %s971_s5 = inlined_call_operand.hbm [shape: bf16[2,8,96], index: 5, kind: output, shape index: {}]  }
   0x1   :  { %974 = sst [smem:[#allocation12_spill]] %s969_s3 }
   0x2   :  { %10 = vsyncpa [#allocation3], 0 }
   0x3   :  { %12 = vsyncpa [#allocation3 + $0x1], 0 }
   0x4   :  { %13 = vsyncpa [#allocation6], 0 }
   0x5   :  { %14 = vsyncpa [#allocation4], 0 }
   0x6   :  { %16 = vsyncpa [#allocation4 + $0x1], 0  ;;  %s771_s18 = smov 0   ;;  %s773_s19 = smov 0  }
   0x7   :  { %s775_s20 = smov 0   ;;  %s777_s21 = smov 0  }
   0x8   :  { %s779_s22 = smov 0   ;;  %s781_s23 = smov 0  }
   0x9 LB: > { %s481_s24 = sadd.s32 4294967295, %s732_s23   ;;  %s482_s25 = sadd.s32 4294967294, %s732_s23   ;;  %s732_s23 = sphi %s781_s23, %s22_s23   ;;  %s728_s22 = sphi %s779_s22, %s994_s22   ;;  %s724_s21 = sphi %s777_s21, %s993_s21   ;;  %s720_s20 = sphi %s775_s20, %s992_s20   ;;  %s716_s19 = sphi %s773_s19, %s991_s19   ;;  %s712_s18 = sphi %s771_s18, %s990_s18  }
   0xa   : > { %p56_p0 = scmp.ne.s32.totalorder %s716_s19, %s712_s18  ;;  %p805_p1 = scmp.eq.s32.totalorder %s481_s24, 0 }
   0xb   : > { %p809_p2 = scmp.eq.s32.totalorder %s481_s24, 1  ;;  %p172_p3 = scmp.eq.s32.totalorder %s482_s25, 1 }
   0xc   : > { %p815_p4 = por %p805_p1, %p56_p0  ;;  %p483_p5 = scmp.ge.s32.totalorder %s732_s23, 1 }
   0xd   : > { %p820_p6 = por %p172_p3, %p56_p0  ;;  %p179_p7 = scmp.lt.s32.totalorder %s732_s23, 3 }
   0xe   : > { %s977_s28 = scalar_select %p815_p4, 1, 0 }
   0xf   : > { %s978_s29 = scalar_select %p820_p6, 1, 0 }
  0x10   : > { %p825_p8 = pnand %p483_p5, %p179_p7  ;;  %s734_s6 = smov [#allocation5]  }
  0x11   : > { %s197_s7 = sshll.u32 %s734_s6, 4  ;;  %s34_s9 = sadd.s32 1, %s728_s22  ;;  %s198_s7 = int_to_ptr.vmem [resolvable:$true] %s197_s7 }
  0x12   : > { %p521_p9 = pneg %p825_p8  ;;  %s605_s10 = scalar_lea.vmem %s198_s7, 256 }
  0x13   : > { %p606_p13 = scmp.ne.s32.totalorder %s198_s7, %s605_s10  ;;  %p613_p5 = scmp.lt.s32.totalorder %s198_s7, %s198_s7 }
  0x14   : > { %p834_p11 = pnand %p521_p9, %p805_p1  ;;  %p614_p7 = scmp.lt.s32.totalorder %s605_s10, %s605_s10 }
  0x16   : > { %p596_p12 = pneg %p834_p11  ;;  %p615_p6 = por %p614_p7, %p613_p5 }
  0x18   : > { %p608_p0 = pnand %p606_p13, %p596_p12 }
  0x1a   : > { %p609_p3 = pneg %p608_p0 }
  0x1c   : > { %p616_p4 = pnand %p615_p6, %p609_p3 }
  0x1e   : > { %619 = shalt.err (!%p616_p4)
}
  0x1f   : > { %s735_s11 = smov 64   ;;  %s736_s12 = smov 4  }
  0x20   : > { %s981_s3 = sld [smem:[#allocation12_spill]]  ;;  %p36_p6 = scmp.ge.s32.totalorder %s34_s9, 2 }
  0x21   : > { %s43_s15 = sadd.s32 1, %s720_s20  ;;  %p50_p4 = scmp.ne.s32.totalorder %s720_s20, %s716_s19 }
  0x22   : > { %p51_p9 = scmp.eq.s32.totalorder %s732_s23, 0  ;;  %s996_s9 = smov (%p36_p6, %s34_s9), 0 }
  0x23   : > { %982 = sst [smem:[#allocation11_spill]] %s996_s9  ;;  %p858_p13 = por %p809_p2, %p50_p4 }
  0x24   : > { %p852_p12 = por %p51_p9, %p50_p4  ;;  %s38_s24 = ssub.s32 %s728_s22, %s996_s9 }
  0x25   : > { %p534_p0 = scmp.lt.s32.totalorder %s732_s23, 2  ;;  %s214_s25 = sand.u32 1, %s720_s20  }
  0x26   : > { %524 = dma.hbm_to_vmem [thread:$0]  (!%p834_p11), %s981_s3, 256, %s198_s7, [#allocation6], %s735_s11, %s735_s11, %s736_s12  }
  0x27   : > { %p41_p11 = scmp.eq.s32.totalorder %s38_s24, 0  ;;  %s486_s6 = sshll.u32 %s214_s25, 2 }
  0x28   : > { %s487_s8 = sshll.u32 %s728_s22, 6  ;;  %s218_s13 = scalar_lea.vmem [#allocation2], %s486_s6 }
  0x29   : > { %s867_s7 = scalar_select %p41_p11, %s720_s20, %s43_s15  }
  0x2a   : > { %s224_s12 = scalar_lea.hbm %s966_s0, %s487_s8  ;;  %s226_s14 = sshll.u32 %s218_s13, 4  ;;  %s227_s14 = int_to_ptr.vmem [resolvable:$true] %s226_s14 }
  0x2b   : > { %p875_p2 = pnand %p534_p0, %p852_p12  ;;  %s215_s3 = scalar_lea.sflag [#allocation3], %s214_s25 }
  0x2c   : > { %s633_s24 = scalar_lea.vmem %s227_s14, 64  ;;  %s737_s15 = smov [#allocation2]  }
  0x2d   : > { %p622_p3 = pneg %p875_p2  ;;  %p634_p5 = scmp.ne.s32.totalorder %s227_s14, %s633_s24 }
  0x2e   : > { %s638_s9 = sshll.u32 %s737_s15, 4  ;;  %s639_s9 = int_to_ptr.vmem [resolvable:$false] %s638_s9 }
  0x2f   : > { %p636_p7 = pnand %p634_p5, %p622_p3  ;;  %s640_s8 = scalar_lea.vmem %s639_s9, 128 }
  0x30   : > { %p641_p4 = scmp.lt.s32.totalorder %s227_s14, %s639_s9  ;;  %p642_p9 = scmp.lt.s32.totalorder %s640_s8, %s633_s24 }
  0x31   : > { %p637_p6 = pneg %p636_p7 }
  0x32   : > { %p643_p11 = por %p642_p9, %p641_p4 }
  0x34   : > { %p644_p10 = pnand %p643_p11, %p637_p6 }
  0x36   : > { %647 = shalt.err (!%p644_p10)
}
  0x37   : > { %528 = dma.hbm_to_vmem [thread:$0]  (!%p875_p2), %s224_s12, 64, %s227_s14, %s215_s3  }
  0x38   : > { %235 = sbr.rel (%p825_p8) target bundleno = 588 (0x24c), region = 40  ;;  %s886_s16 = sand.u32 (!%p825_p8), 1, %s716_s19  }
  0x39   : > { %s489_s25 = sshll.u32 (!%p825_p8), %s886_s16, 2  ;;  %s238_s6 = scalar_lea.sflag (!%p825_p8), [#allocation3], %s886_s16 }
  0x3a   : > { %s241_s9 = scalar_lea.vmem (!%p825_p8), [#allocation2], %s489_s25  ;;  %p986_p12 = scmp.ne.s32.totalorder (!%p825_p8), %s977_s28, 0 }
  0x3d   : > { %699 = dma.done.wait (%p986_p12), %s238_s6, 64  }
  0x3e   : > { %701 = vsyncadd (%p986_p12), %s238_s6, 4294967232 }
  0x3f   : > { %703 = dma.done.wait (%p805_p1), [#allocation6], 256  }
  0x40   : > { %705 = vsyncadd (%p805_p1), [#allocation6], 4294967040  ;;  %vm277_vm0 = vcmask 261120   ;;  %v273_v0 = vld [vmem:[%s241_s9] sm:$0xf]  ;;  %v590_v8 = vld [vmem:[#allocation5 + $0x8] sm:$0xff]  }
  0x41   : > { %v274_v1 = vunpack.c.l.bf16 %v273_v0  ;;  %v738_v9 = vmov 0.0   ;;  %vm739_vm1 = vmmov 0   ;;  %v591_v10 = vld [vmem:[#allocation5] sm:$0xff]   ;;  %v492_v15 = vld [vmem:[%s967_s1] ss:$0 sm:$0xff]  ;;  %s499_s12 = sshll.u32 %s724_s21, 6 }
  0x42   : > { %505 = vmatprep.subr.bf16.mxu0 %v738_v9  ;;  %509 = vmatprep.mubr.msk.bf16.mxu0 %vm739_vm1, %v738_v9  ;;  %v493_v17 = vld [vmem:[%s968_s2] ss:$0 sm:$0xff]  ;;  %s271_s13 = scalar_lea.vmem [#allocation7], %s489_s25  ;;  %vm374_vm2 = vcmask 781312   ;;  %s918_s15 = scalar_lea.hbm %s971_s5, %s499_s12 }
  0x43   : > { %v278_v2 = vsel %vm277_vm0, %v274_v1, 0.0  ;;  %506 = vmatpush3.bf16.msra.mxu0 %v590_v8  ;;  %v494_v21 = vld [vmem:[%s970_s4] ss:$0 sm:$0xff]  ;;  %s391_s14 = sshll.u32 %s271_s13, 4  ;;  %s377_s21 = scalar_lea.sflag [#allocation4], %s886_s16  ;;  %s920_s14 = int_to_ptr.vmem [resolvable:$true] %s391_s14 }
  0x44   : > { %279 = vadd.xlane.f32.xlu0 %v278_v2  ;;  %507 = vmatprep.subr.bf16.mxu0 %v738_v9  ;;  %s648_s8 = scalar_lea.vmem %s920_s14, 64  ;;  %s740_s25 = smov [#allocation7]  }
  0x45   : > { %p649_p1 = scmp.ne.s32.totalorder %s920_s14, %s648_s8  ;;  %s652_s6 = sshll.u32 %s740_s25, 4  ;;  %s653_s6 = int_to_ptr.vmem [resolvable:$false] %s652_s6 }
  0x46   : > { %s654_s9 = scalar_lea.vmem %s653_s6, 128  ;;  %p655_p0 = scmp.lt.s32.totalorder %s920_s14, %s653_s6 }
  0x47   : > { %508 = vmatpush3.bf16.msra.mxu0 %v591_v10  ;;  %p650_p8 = pnand %p649_p1, %p858_p13  ;;  %p656_p2 = scmp.lt.s32.totalorder %s654_s9, %s648_s8 }
  0x49   : > { %p651_p10 = pneg %p650_p8  ;;  %p657_p3 = por %p656_p2, %p655_p0 }
  0x4b   : > { %p658_p5 = pnand %p657_p3, %p651_p10 }
  0xcd   : > { %v280_v3 = vpop.xlane.xlu0 %279 }
  0xce   : > { %v282_v4 = vmul.f32 0.03125, %v280_v3 }
  0xd0   : > { %v283_v5 = vsub.f32 %v274_v1, %v282_v4 }
  0xd2   : > { %v284_v6 = vmul.f32 %v283_v5, %v283_v5 }
  0xd4   : > { %v285_v7 = vsel %vm277_vm0, %v284_v6, 0.0 }
  0xd5   : > { %286 = vadd.xlane.f32.xlu0 %v285_v7 }
 0x15e   : > { %v287_v11 = vpop.xlane.xlu0 %286 }
 0x15f   : > { %v288_v12 = vmul.f32 0.03125, %v287_v11 }
 0x161   : > { %v289_v13 = vadd.f32 1e-05, %v288_v12 }
 0x163   : > { %592 = vrsqrt.f32 %v289_v13 }
 0x170   : > { %v593_v14 = vpop.eup %592 }
 0x171   : > { %v291_v16 = vmul.f32 %v593_v14, %v283_v5 }
 0x173   : > { %v298_v18 = vmul.f32 %v492_v15, %v291_v16 }
 0x175   : > { %v305_v19 = vadd.f32 %v493_v17, %v298_v18 }
 0x177   : > { %v306_v20 = vpack.c.bf16 %v305_v19, %v305_v19 }
 0x179   : > { %510 = vmatmul.mubr.msk.bf16.vlgmr.msra.gmra.mxu0 %vm277_vm0, %v306_v20 }
 0x239   : > { %v367_v22 = vpop.f32.mrf.mxu0 }
 0x23a   : > { %v368_v23 = vadd.f32 %v494_v21, %v367_v22 }
 0x23b   : > { %v511_v24 = vpop.f32.mrf.mxu0 }
 0x23c   : > { %v373_v25 = vpack.c.bf16 %v368_v23, %v368_v23 }
 0x23d   : > { %v370_v26 = vpop.f32.mrf.mxu0 }
 0x23e   : > { %375 = vst.msk [vmem:[%s271_s13] sm:$0xf] %vm374_vm2, %v373_v25 }
 0x23f   : > { %v512_v27 = vpop.f32.mrf.mxu0 }
 0x240   : > { %661 = shalt.err (!%p658_p5)
}
 0x241   : > { %s662_s3 = scalar_lea.hbm %s918_s15, 64  ;;  %s666_s28 = scalar_lea.hbm %s971_s5, 128 }
 0x242   : > { %p663_p7 = scmp.ne.s32.totalorder %s918_s15, %s662_s3  ;;  %p667_p9 = scmp.lt.s32.totalorder %s918_s15, %s971_s5 }
 0x243   : > { %p668_p11 = scmp.lt.s32.totalorder %s666_s28, %s662_s3 }
 0x244   : > { %p664_p6 = pnand %p663_p7, %p858_p13 }
 0x245   : > { %p669_p12 = por %p668_p11, %p667_p9 }
 0x246   : > { %p665_p4 = pneg %p664_p6 }
 0x248   : > { %p670_p1 = pnand %p669_p12, %p665_p4 }
 0x24a   : > { %673 = shalt.err (!%p670_p1)
}
 0x24b   : > { %519 = dma.vmem_to_hbm [thread:$0]  (%p858_p13), %s920_s14, 64, %s918_s15, %s377_s21  }
 0x24c PF: > { %s403_s11 = sand.u32 1, %s712_s18   ;;  %p987_p8 = scmp.ne.s32.totalorder %s978_s29, 0 }
 0x24d   : > { %p988_p10 = scmp.ge.s32.totalorder %s732_s23, 2  ;;  %s404_s12 = scalar_lea.sflag [#allocation4], %s403_s11 }
 0x24f   : > { %p530_p0 = pnand %p988_p10, %p987_p8 }
 0x251   : > { %p531_p2 = pneg %p530_p0 }
 0x253   : > { %707 = dma.done.wait (%p531_p2), %s404_s12, 64  }
 0x254   : > { %709 = vsyncadd (%p531_p2), %s404_s12, 4294967232  ;;  %s22_s23 = sadd.s32 1, %s732_s23   ;;  %s989_s17 = sld [smem:[#allocation11_spill]] }
 0x255   : > { %p19_p3 = scmp.ge.s32.totalorder %s22_s23, 4   ;;  %s990_s18 = smov %s716_s19 }
 0x256   : > { %s991_s19 = smov %s720_s20  ;;  %s992_s20 = smov %s867_s7 }
 0x257   : > { %s993_s21 = smov %s728_s22  ;;  %21 = sbr.rel (!%p19_p3) target bundleno = 9 (0x9), region = 89 }
 0x25a   : > { %s994_s22 = smov %s989_s17 }
 0x25c   :  { %409 = vsyncpa [#allocation3], 1 }
 0x25d   :  { %411 = vsyncpa [#allocation3 + $0x1], 1 }
 0x25e   :  { %412 = vsyncpa [#allocation6], 1 }
 0x25f   :  { %413 = vsyncpa [#allocation4], 1 }
 0x260   :  { %415 = vsyncpa [#allocation4 + $0x1], 1 }

</bundles_post_ra>
